<compile_context>
chip_gen: v7x
topology: tpu7x:2x2x1
jax: 0.10.0
libtpu: 0.0.40
codegen_flags: <defaults>
</compile_context>

<pallas_src>
import functools

import jax
import jax.numpy as jnp
from jax.experimental import pallas as pl
from jax.experimental.pallas import tpu as pltpu


def _round_up(x, m):
    return ((x + m - 1) // m) * m


def _pick_tile_m(M, tile_m_max):
    """Largest M-tile that divides M exactly (no padding, no output slice),
    is a multiple of 8 (sublane rule), and prefers an even grid of >= 4 steps
    so v7x's two TensorCores stay balanced. Returns None if no divisor."""
    if M % 8 != 0:
        return None
    hi = min(tile_m_max, M)
    divisors = [d for d in range(8, hi + 1, 8) if M % d == 0]
    if not divisors:
        return None
    even4 = [d for d in divisors if (M // d) % 2 == 0 and (M // d) >= 4]
    even = [d for d in divisors if (M // d) % 2 == 0]
    pool = even4 or even or divisors
    return max(pool)


def _vmem_limit_bytes():
    """Generation-aware VMEM budget: ~75% of per-core capacity
    (v5e/v6e: 128 MiB -> ~96 MiB; v7x: 64 MiB -> ~48 MiB)."""
    try:
        cap = int(pltpu.get_tpu_info().vmem_capacity_bytes)
        return max(32 * 1024 * 1024, min((cap * 3) // 4, 100 * 1024 * 1024))
    except Exception:  # conservative, safe on every generation
        return 48 * 1024 * 1024


def _patch_proj_kernel(x_ref, w_ref, b_ref, o_ref):
    # bf16 x bf16 -> f32 accumulation on the MXU; f32 bias add rides the VPU.
    acc = jnp.dot(x_ref[...], w_ref[...], preferred_element_type=jnp.float32)
    o_ref[...] = (acc + b_ref[...]).astype(o_ref.dtype)


@functools.partial(jax.jit, static_argnames=("patch_size", "tile_m", "out_dtype"))
def patch_embed(x, weight, bias, *, patch_size, tile_m=1024, out_dtype=jnp.bfloat16):
    """PatchEmbed forward.

    Args:
      x:      (B, C, H, W) image, NCHW (PyTorch convention).
      weight: (embed_dim, C, ph, pw) Conv2d weight (PyTorch OIHW layout).
      bias:   (embed_dim,) bias.
      patch_size: int (square patches).
      tile_m: max M-axis tile (rows of the patch matrix per grid step).
              1024 is safe on all generations; v5e/v6e can pass 2048.
      out_dtype: output dtype. bf16 (default) halves the HBM writeback; pass
              jnp.float32 to match the PyTorch module's output dtype exactly.

    Returns:
      (B, N_patches, embed_dim) array of dtype `out_dtype`.
    """
    B, C, H, W = x.shape
    ph = pw = patch_size
    assert H % ph == 0 and W % pw == 0, "image size must be divisible by patch size"
    gh, gw = H // ph, W // pw
    n_patches = gh * gw
    embed_dim = weight.shape[0]
    K = C * ph * pw
    M = B * n_patches

    # Lane-dense output: pad E to a multiple of 128 (weights/bias only, tiny).
    E_pad = _round_up(embed_dim, 128)

    # M tiling: prefer a tile that divides M exactly so the patch matrix needs
    # no padding pass and the output needs no row slice.
    TM = _pick_tile_m(M, tile_m)
    if TM is None:
        TM = min(_round_up(M, 8), tile_m)
        M_pad = _round_up(M, TM)
    else:
        M_pad = M

    # im2col as a single fused XLA pass (cast -> reshape -> transpose):
    # (B, C, H, W) -> (M, K) bf16, patch vector ordered (c, ph, pw) to match
    # the PyTorch Conv2d weight layout (E, C, ph, pw).
    patches = x.astype(jnp.bfloat16)
    patches = patches.reshape(B, C, gh, ph, gw, pw)
    patches = patches.transpose(0, 2, 4, 1, 3, 5)      # (B, gh, gw, C, ph, pw)
    patches = patches.reshape(M, K)
    if M_pad != M:
        patches = jnp.pad(patches, ((0, M_pad - M), (0, 0)))

    # Conv weight (E, C, ph, pw) -> GEMM weight (K, E_pad), bf16 (small).
    w_mat = weight.reshape(embed_dim, K).T.astype(jnp.bfloat16)
    w_mat = jnp.pad(w_mat, ((0, 0), (0, E_pad - embed_dim)))

    # Bias kept in f32, added to the f32 accumulator inside the kernel.
    b_row = jnp.pad(bias.astype(jnp.float32), (0, E_pad - embed_dim)).reshape(1, E_pad)

    out_dt = jnp.dtype(out_dtype)
    bytes_accessed = (
        M_pad * K * 2                      # bf16 patch matrix
        + K * E_pad * 2                    # bf16 weight (resident)
        + E_pad * 4                        # f32 bias
        + M_pad * E_pad * out_dt.itemsize  # output
    )
    cost = pl.CostEstimate(
        flops=2 * M_pad * K * E_pad,
        transcendentals=0,
        bytes_accessed=bytes_accessed,
    )

    out = pl.pallas_call(
        _patch_proj_kernel,
        out_shape=jax.ShapeDtypeStruct((M_pad, E_pad), out_dt),
        grid_spec=pltpu.PrefetchScalarGridSpec(
            num_scalar_prefetch=0,
            grid=(M_pad // TM,),
            in_specs=[
                # Patch-matrix tile: K equals the full array dim, so it is
                # exempt from the 128-lane rule (no K padding needed).
                pl.BlockSpec((TM, K), lambda i: (i, 0)),
                # Weight / bias: constant index_map -> fetched once, resident
                # in VMEM across all grid steps. (pl.Buffered(1) could drop
                # their second buffer; left at default since the VMEM budget
                # is comfortable at these tile sizes.)
                pl.BlockSpec((K, E_pad), lambda i: (0, 0)),
                pl.BlockSpec((1, E_pad), lambda i: (0, 0)),
            ],
            out_specs=pl.BlockSpec((TM, E_pad), lambda i: (i, 0)),
        ),
        compiler_params=pltpu.CompilerParams(
            dimension_semantics=("parallel",),
            vmem_limit_bytes=_vmem_limit_bytes(),
        ),
        cost_estimate=cost,
    )(patches, w_mat, b_row)

    # Drop padding (no-ops when TM | M and embed_dim is a multiple of 128).
    if M_pad != M:
        out = out[:M]
    if E_pad != embed_dim:
        out = out[:, :embed_dim]
    return out.reshape(B, n_patches, embed_dim)


def _reference_patch_embed(x, weight, bias, patch_size):
    # Pure-JAX f32 reference: strided conv (NCHW, OIHW) + flatten(2).transpose(1,2).
    y = jax.lax.conv_general_dilated(
        x, weight,
        window_strides=(patch_size, patch_size),
        padding="VALID",
        dimension_numbers=("NCHW", "OIHW", "NCHW"),
    ) + bias[None, :, None, None]
    B, E, gh, gw = y.shape
    return y.reshape(B, E, gh * gw).transpose(0, 2, 1)


if __name__ == "__main__":
    # Small, module-consistent shapes.
    B, C, H, W = 2, 4, 16, 16
    patch_size = 4
    embed_dim = 32

    key = jax.random.PRNGKey(0)
    kx, kw, kb = jax.random.split(key, 3)
    x = jax.random.normal(kx, (B, C, H, W), dtype=jnp.float32)
    weight = jax.random.normal(
        kw, (embed_dim, C, patch_size, patch_size), dtype=jnp.float32) * 0.02
    bias = jax.random.normal(kb, (embed_dim,), dtype=jnp.float32) * 0.02

    n_patches = (H // patch_size) * (W // patch_size)
    ref = _reference_patch_embed(x, weight, bias, patch_size)

    # Default (bf16 output) path.
    out = patch_embed(x, weight, bias, patch_size=patch_size)
    out = jax.block_until_ready(out)
    assert out.shape == (B, n_patches, embed_dim)
    assert out.dtype == jnp.bfloat16
    # bf16 inputs/output + f32 accumulation vs f32 conv reference.
    assert jnp.allclose(out.astype(jnp.float32), ref, atol=2e-2, rtol=2e-2), \
        "mismatch vs conv reference (bf16 output)"

    # Exact-dtype path (matches the PyTorch module's f32 output).
    out_f32 = patch_embed(x, weight, bias, patch_size=patch_size,
                          out_dtype=jnp.float32)
    out_f32 = jax.block_until_ready(out_f32)
    assert out_f32.shape == (B, n_patches, embed_dim)
    assert out_f32.dtype == jnp.float32
    assert jnp.allclose(out_f32, ref, atol=2e-2, rtol=2e-2), \
        "mismatch vs conv reference (f32 output)"

    print("KERNEL_OK")
</pallas_src>

<mosaic_0001>
module attributes {stable_mosaic.version = 11 : i64} {
  func.func @_patch_proj_kernel(%arg0: i32, %arg1: memref<8x64xbf16, #tpu.memory_space<vmem>>, %arg2: memref<64x128xbf16, #tpu.memory_space<vmem>>, %arg3: memref<1x128xf32, #tpu.memory_space<vmem>>, %arg4: memref<8x128xbf16, #tpu.memory_space<vmem>>) attributes {dimension_semantics = [#tpu.dimension_semantics<parallel>], iteration_bounds = array<i64: 4>, scalar_prefetch = 0 : i64, scratch_operands = 0 : i64, tpu.core_type = #tpu.core_type<tc>, window_params = [{transform_indices = @transform_0, window_bounds = array<i64: 8, 64>}, {pipeline_mode = #tpu.pipeline_mode<synchronous>, transform_indices = @transform_1, window_bounds = array<i64: 64, 128>}, {pipeline_mode = #tpu.pipeline_mode<synchronous>, transform_indices = @transform_2, window_bounds = array<i64: 1, 128>}, {transform_indices = @transform_3, window_bounds = array<i64: 8, 128>}]} {
    %c0 = arith.constant 0 : index
    %c0_0 = arith.constant 0 : index
    %0 = vector.load %arg1[%c0, %c0_0] : memref<8x64xbf16, #tpu.memory_space<vmem>>, vector<8x64xbf16>
    %c0_1 = arith.constant 0 : index
    %c0_2 = arith.constant 0 : index
    %1 = vector.load %arg2[%c0_1, %c0_2] : memref<64x128xbf16, #tpu.memory_space<vmem>>, vector<64x128xbf16>
    %cst = arith.constant dense<0.000000e+00> : vector<8x128xf32>
    %2 = tpu.matmul %0, %1, %cst {dimension_numbers = #tpu.dot_dimension_numbers<[1], [0], [0], [1], [0, 0, 1, 1], [], []>} : vector<8x64xbf16>, vector<64x128xbf16>, vector<8x128xf32> -> vector<8x128xf32>
    %c0_3 = arith.constant 0 : index
    %c0_4 = arith.constant 0 : index
    %3 = vector.load %arg3[%c0_3, %c0_4] : memref<1x128xf32, #tpu.memory_space<vmem>>, vector<1x128xf32>
    %4 = vector.broadcast %3 : vector<1x128xf32> to vector<8x128xf32>
    %5 = arith.addf %2, %4 : vector<8x128xf32>
    %6 = arith.truncf %5 : vector<8x128xf32> to vector<8x128xbf16>
    %c0_5 = arith.constant 0 : index
    %c0_6 = arith.constant 0 : index
    %7 = vector.load %arg4[%c0_5, %c0_6] : memref<8x128xbf16, #tpu.memory_space<vmem>>, vector<8x128xbf16>
    tpu.vector_store %arg4[%c0_5, %c0_6], %6 {strides = array<i32>} : memref<8x128xbf16, #tpu.memory_space<vmem>>, vector<8x128xbf16>,
    return
  }
  func.func @transform_0(%arg0: i32) -> (i32, i32) {
    %c0_i32 = arith.constant 0 : i32
    %c0_i32_0 = arith.constant 0 : i32
    return %arg0, %c0_i32 : i32, i32
  }
  func.func @transform_1(%arg0: i32) -> (i32, i32) {
    %c0_i32 = arith.constant 0 : i32
    %c0_i32_0 = arith.constant 0 : i32
    %c0_i32_1 = arith.constant 0 : i32
    return %c0_i32, %c0_i32_0 : i32, i32
  }
  func.func @transform_2(%arg0: i32) -> (i32, i32) {
    %c0_i32 = arith.constant 0 : i32
    %c0_i32_0 = arith.constant 0 : i32
    %c0_i32_1 = arith.constant 0 : i32
    return %c0_i32, %c0_i32_0 : i32, i32
  }
  func.func @transform_3(%arg0: i32) -> (i32, i32) {
    %c0_i32 = arith.constant 0 : i32
    %c0_i32_0 = arith.constant 0 : i32
    return %arg0, %c0_i32 : i32, i32
  }
}

</mosaic_0001>

<bundles_post_ra>
// kernel: patch_embed.1
= control target key start
LH: loop header
LB: loop body
LE: loop exit
PB: predicated region body
PF: predicated region fallthrough
CT: control target
= control target key end

     0   :  { %8 = vsyncpa [#allocation3], 0  ;;  %s606_s0 = inlined_call_operand.vmem [shape: bf16[32,64], index: 0, kind: input, shape index: {}]   ;;  %s607_s1 = inlined_call_operand.vmem [shape: bf16[64,128], index: 1, kind: input, shape index: {}]   ;;  %s608_s2 = inlined_call_operand.vmem [shape: f32[1,128], index: 2, kind: input, shape index: {}]   ;;  %s609_s3 = inlined_call_operand.hbm [shape: bf16[32,128], index: 3, kind: output, shape index: {}]  }
   0x1   :  { %10 = vsyncpa [#allocation3 + $0x1], 0  ;;  %s491_s12 = smov 0   ;;  %s493_s13 = smov 0  }
   0x2   :  { %s495_s14 = smov 0   ;;  %s497_s15 = smov 0  }
   0x3 LB: > { %s512_s16 = sadd.s32 4294967295, %s466_s15   ;;  %s326_s17 = sadd.s32 4294967294, %s466_s15   ;;  %s466_s15 = sphi %s497_s15, %s615_s15   ;;  %s462_s14 = sphi %s495_s14, %s614_s14   ;;  %s458_s13 = sphi %s493_s13, %s613_s13   ;;  %s454_s12 = sphi %s491_s12, %s612_s12  }
   0x4   : > { %s516_s18 = sadd.s32 1, %s466_s15   ;;  %s91_s19 = sadd.s32 1, %s462_s14 }
   0x5   : > { %s88_s20 = ssub.s32 %s466_s15, %s516_s18  ;;  %p101_p0 = scmp.ne.s32.totalorder %s462_s14, %s458_s13 }
   0x6   : > { %p89_p1 = scmp.eq.s32.totalorder %s88_s20, 0  ;;  %p102_p2 = scmp.eq.s32.totalorder %s512_s16, 3 }
   0x7   : > { %p107_p3 = scmp.ne.s32.totalorder %s458_s13, %s454_s12  ;;  %p108_p4 = scmp.eq.s32.totalorder %s326_s17, 3 }
   0x8   : > { %s527_s21 = scalar_select %p89_p1, %s462_s14, %s91_s19  }
   0x9   : > { %p529_p5 = por %p102_p2, %p101_p0  ;;  %p533_p6 = por %p108_p4, %p107_p3 }
   0xa   : > { %p329_p7 = scmp.ge.s32.totalorder %s466_s15, 1  ;;  %p139_p8 = scmp.lt.s32.totalorder %s466_s15, 5 }
   0xc   : > { %p140_p9 = pnand %p329_p7, %p139_p8 }
   0xd   : > { %v400_v0 = vld [vmem:[%s607_s1] sm:$0xff] (!%p140_p9)   ;;  %v468_v1 = vmov (!%p140_p9), 0.0   ;;  %v401_v2 = vld [vmem:[%s607_s1 + $0x8] sm:$0xff] (!%p140_p9)   ;;  %vm469_vm0 = vmmov (!%p140_p9), 0   ;;  %p162_p10 = scmp.lt.s32.totalorder (!%p140_p9), %s512_s16, 3  ;;  %v402_v3 = vld [vmem:[%s607_s1 + $0x10] sm:$0xff] (!%p140_p9)  }
   0xe   : > { %143 = sbr.rel (%p140_p9) target bundleno = 260 (0x104), region = 32  ;;  %347 = vmatprep.subr.bf16.mxu0 (!%p140_p9), %v468_v1  ;;  %355 = vmatprep.mubr.msk.bf16.mxu0 (!%p140_p9), %vm469_vm0, %v468_v1  ;;  %v403_v4 = vld [vmem:[%s607_s1 + $0x18] sm:$0xff] (!%p140_p9)   ;;  %vm207_vm1 = vcmask (!%p140_p9), 523264   ;;  %s159_s10 = sand.u32 (!%p140_p9), 1, %s458_s13   ;;  %v332_v6 = vld [vmem:[%s608_s2] ss:$0 sm:$0xff] (!%p140_p9) }
   0xf   : > { %348 = vmatpush3.bf16.msra.mxu0 (!%p140_p9), %v400_v0  ;;  %s330_s11 = sshll.u32 (!%p140_p9), %s159_s10, 2  ;;  %s339_s20 = sshll.u32 (!%p140_p9), %s512_s16, 6 }
  0x10   : > { %349 = vmatprep.subr.bf16.mxu0 (!%p140_p9), %v468_v1  ;;  %s161_s24 = scalar_lea.vmem (!%p140_p9), [#allocation2], %s330_s11  ;;  %s254_s29 = scalar_lea.sflag (!%p140_p9), [#allocation3], %s159_s10 }
  0x11   : > { %s267_s25 = sshll.u32 (!%p140_p9), %s161_s24, 4  ;;  %s470_s30 = smov (!%p140_p9), [#allocation2]   ;;  %s566_s25 = int_to_ptr.vmem [resolvable:$true] %s267_s25 }
  0x13   : > { %350 = vmatpush3.bf16.msra.mxu0 (!%p140_p9), %v401_v2 }
  0x14   : > { %351 = vmatprep.subr.bf16.mxu0 (!%p140_p9), %v468_v1 }
  0x15   : > { %s163_s28 = scalar_select %p162_p10, %s512_s16, 3 }
  0x16   : > { %s404_s16 = scalar_lea.vmem %s566_s25, 64 }
  0x17   : > { %s331_s4 = sshll.u32 %s163_s28, 2  ;;  %352 = vmatpush3.bf16.msra.mxu0 %v402_v3  ;;  %s564_s28 = scalar_lea.hbm %s609_s3, %s339_s20 }
  0x18   : > { %353 = vmatprep.subr.bf16.mxu0 %v468_v1  ;;  %s165_s9 = scalar_lea.vmem %s606_s0, %s331_s4  ;;  %p405_p11 = scmp.ne.s32.totalorder %s566_s25, %s404_s16 }
  0x19   : > { %v167_v5 = vld [vmem:[%s165_s9] sm:$0xf]  ;;  %s408_s4 = sshll.u32 %s470_s30, 4  ;;  %s409_s4 = int_to_ptr.vmem [resolvable:$false] %s408_s4 }
  0x1a   : > { %p406_p12 = pnand %p405_p11, %p529_p5  ;;  %s410_s5 = scalar_lea.vmem %s409_s4, 128 }
  0x1b   : > { %354 = vmatpush3.bf16.msra.mxu0 %v403_v4  ;;  %p411_p0 = scmp.lt.s32.totalorder %s566_s25, %s409_s4  ;;  %p412_p1 = scmp.lt.s32.totalorder %s410_s5, %s404_s16 }
  0x1c   : > { %p407_p13 = pneg %p406_p12 }
  0x1d   : > { %p413_p2 = por %p412_p1, %p411_p0 }
  0x1e   : > { %356 = vmatmul.mubr.msk.bf16.vlgmr.msra.gmra.mrb[0].mxu0 %vm207_vm1, %v167_v5 }
  0x1f   : > { %p414_p3 = pnand %p413_p2, %p407_p13 }
  0xf1   : > { %v245_v7 = vpop.f32.mrb[0].mxu0 }
  0xf2   : > { %v246_v8 = vadd.f32 %v332_v6, %v245_v7  ;;  %v357_v9 = vpop.f32.mrb[1].mxu0 }
  0xf3   : > { %v248_v10 = vpop.f32.mrb[2].mxu0 }
  0xf4   : > { %v251_v11 = vpack.c.bf16 %v246_v8, %v246_v8  ;;  %v358_v12 = vpop.f32.mrb[3].mxu0 }
  0xf6   : > { %252 = vst [vmem:[%s161_s24] sm:$0xf] %v251_v11 }
  0xf7   : > { %417 = shalt.err (!%p414_p3)
}
  0xf8   : > { %s418_s6 = scalar_lea.hbm %s564_s28, 64  ;;  %s422_s9 = scalar_lea.hbm %s609_s3, 256 }
  0xf9   : > { %p419_p4 = scmp.ne.s32.totalorder %s564_s28, %s418_s6  ;;  %p423_p9 = scmp.lt.u32.totalorder %s564_s28, %s609_s3 }
  0xfa   : > { %p424_p10 = scmp.lt.u32.totalorder %s422_s9, %s418_s6  ;;  %p426_p12 = scmp.lt.u32.totalorder %s418_s6, %s564_s28 }
  0xfb   : > { %p420_p7 = pnand %p419_p4, %p529_p5 }
  0xfc   : > { %p425_p11 = por %p424_p10, %p423_p9 }
  0xfd   : > { %p421_p8 = pneg %p420_p7 }
  0xfe   : > { %p427_p13 = por %p426_p12, %p425_p11 }
 0x100   : > { %p428_p0 = pnand %p427_p13, %p421_p8 }
 0x102   : > { %431 = shalt.err (!%p428_p0)
}
 0x103   : > { %359 = dma.vmem_to_hbm [thread:$0]  (%p529_p5), %s566_s25, 64, %s564_s28, %s254_s29  }
 0x104 PF: > { %p365_p1 = scmp.ge.s32.totalorder %s466_s15, 2  ;;  %s279_s17 = sand.u32 1, %s454_s12  }
 0x105   : > { %s280_s19 = scalar_lea.sflag [#allocation3], %s279_s17 }
 0x106   : > { %p362_p2 = pnand %p365_p1, %p533_p6 }
 0x108   : > { %449 = dma.done.wait (!%p362_p2), %s280_s19, 64  }
 0x109   : > { %451 = vsyncadd (!%p362_p2), %s280_s19, 4294967232  ;;  %p13_p3 = scmp.ge.s32.totalorder %s516_s18, 6   ;;  %s612_s12 = smov %s458_s13 }
 0x10a   : > { %s613_s13 = smov %s462_s14  ;;  %s614_s14 = smov %s527_s21 }
 0x10b   : > { %s615_s15 = smov %s516_s18  ;;  %15 = sbr.rel (!%p13_p3) target bundleno = 3 (0x3), region = 67 }
 0x112   :  { %285 = vsyncpa [#allocation3], 1 }
 0x113   :  { %287 = vsyncpa [#allocation3 + $0x1], 1 }

</bundles_post_ra>
